<compile_context>
chip_gen: v7x
topology: tpu7x:2x2x1
jax: 0.10.0
libtpu: 0.0.40
codegen_flags: <defaults>
</compile_context>

<pallas_src>
import functools

import jax
import jax.numpy as jnp
from jax import lax
from jax.experimental import pallas as pl
from jax.experimental.pallas import tpu as pltpu


# --------------------------------------------------------------------------
# Fused kernel: 3x3 conv (pad=1, no bias) via im2col on the MXU, with the
# PixelShuffle(2) permutation folded into the output store (fold=True).
#   x_ref       : (1, Ci_p, H*W)        f32   (channels on sublane, flat HW on lane)
#   w_ref       : (Co, 9*Ci_p)          bf16  (rows grouped by shuffle quadrant)
#   o_ref       : fold  -> (1, Cq, 4*TH*W) f32 (flattened (2*TH, 2*W) shuffled tile)
#                 !fold -> (1, Co, TH*W)   f32
#   patches_ref : (9*Ci_p, TH*W)        bf16  VMEM scratch (im2col stack)
# --------------------------------------------------------------------------
def _upsample_kernel(x_ref, w_ref, o_ref, patches_ref, *,
                     H, W, TH, Ci_p, Cq, roll_numpy, fold):
    t = pl.program_id(1)
    THW = TH * W
    r0 = t * TH                                        # first conv-output row of tile

    # ---- tile rows + 1-row halo from the per-batch resident flat image ----------
    center = x_ref[0, :, pl.ds(pl.multiple_of(r0 * W, W), THW)]          # (Ci_p, THW)
    top_i = jnp.maximum(r0 - 1, 0)
    bot_i = jnp.minimum(r0 + TH, H - 1)
    top = x_ref[0, :, pl.ds(pl.multiple_of(top_i * W, W), W)]            # (Ci_p, W)
    bot = x_ref[0, :, pl.ds(pl.multiple_of(bot_i * W, W), W)]
    top = jnp.where(r0 > 0, top, 0.0)                  # zero-pad above the image
    bot = jnp.where(r0 + TH < H, bot, 0.0)             # zero-pad below the image

    # Row-shifted flat views for dy = -1 / 0 / +1 (lane axis = flattened (TH, W)).
    if TH > 1:
        up = jnp.concatenate([top, center[:, : (TH - 1) * W]], axis=1)
        down = jnp.concatenate([center[:, W:], bot], axis=1)
    else:
        up, down = top, bot
    rows = (up, center, down)

    # Column-validity masks for dx = -1 / +1 (also kill the row-wrap bleed of the
    # flat lane roll).  Built in-kernel: iota over one row, tiled by lane concat.
    col = lax.broadcasted_iota(jnp.int32, (1, W), 1)
    left_ok = jnp.concatenate([(col >= 1).astype(jnp.float32)] * TH, axis=1)
    right_ok = jnp.concatenate([(col <= W - 2).astype(jnp.float32)] * TH, axis=1)

    # ---- build the (9*Ci_p, THW) bf16 im2col stack directly in VMEM scratch ------
    for kdy, row_src in enumerate(rows):               # dy = -1, 0, +1
        for kdx, dx in enumerate((-1, 0, 1)):
            k = kdy * 3 + kdx
            if dx == 0:
                tap = row_src
            else:
                shift = (-dx) % THW if roll_numpy else dx % THW
                tap = pltpu.roll(row_src, shift=shift, axis=1)
                tap = tap * (left_ok if dx == -1 else right_ok)
            patches_ref[k * Ci_p:(k + 1) * Ci_p, :] = tap.astype(jnp.bfloat16)

    # ---- one deep-K MXU matmul: (Co, 9*Ci_p) x (9*Ci_p, THW) -> (Co, THW) f32 -----
    y = jnp.dot(w_ref[...], patches_ref[...], preferred_element_type=jnp.float32)

    if fold:
        # PixelShuffle(2) folded into the store.  Output block is the flattened
        # (Cq, 2*TH, 2*W) tile; weight rows are pre-grouped so quadrant g = 2*i + j
        # is the contiguous row band [g*Cq, (g+1)*Cq) of y.
        for g in range(4):
            i, j = divmod(g, 2)
            yg = y[g * Cq:(g + 1) * Cq, :]              # (Cq, THW)
            for h in range(TH):
                dst = (2 * h + i) * (2 * W) + j
                o_ref[0, :, pl.ds(dst, W, stride=2)] = (
                    yg[:, h * W:(h + 1) * W].astype(o_ref.dtype))
    else:
        o_ref[0] = y.astype(o_ref.dtype)


# --------------------------------------------------------------------------
# One-time (cached) device probes.  ensure_compile_time_eval keeps them eager
# even if upsample() is traced under an outer jit.
# --------------------------------------------------------------------------
@functools.lru_cache(maxsize=None)
def _roll_is_numpy():
    """True if pltpu.roll follows the jnp.roll convention (shift -> higher idx)."""
    with jax.ensure_compile_time_eval():
        def probe(x_ref, o_ref):
            o_ref[...] = pltpu.roll(x_ref[...], shift=1, axis=1)
        x = jnp.zeros((8, 128), jnp.float32).at[0, 0].set(1.0)
        out = pl.pallas_call(
            probe, out_shape=jax.ShapeDtypeStruct((8, 128), jnp.float32))(x)
        return bool(out[0, 1] == 1.0)


@functools.lru_cache(maxsize=None)
def _strided_store_ok():
    """True if stride-2 lane stores via pl.ds(..., stride=2) lower and work."""
    with jax.ensure_compile_time_eval():
        def probe(x_ref, o_ref):
            o_ref[...] = jnp.zeros_like(o_ref)
            o_ref[:, pl.ds(0, 128, stride=2)] = x_ref[...]
        try:
            x = jnp.ones((8, 128), jnp.float32)
            out = pl.pallas_call(
                probe, out_shape=jax.ShapeDtypeStruct((8, 256), jnp.float32))(x)
            out = jax.block_until_ready(out)
            return bool(jnp.all(out[:, 0::2] == 1.0)) and bool(jnp.all(out[:, 1::2] == 0.0))
        except Exception:
            return False


def _physical_vmem_bytes():
    try:
        info = pltpu.get_tpu_info()
        for name in ("vmem_capacity_bytes", "vmem_size_bytes", "vmem_bytes"):
            v = getattr(info, name, None)
            if v:
                return int(v)
    except Exception:
        pass
    return 64 * 1024 * 1024        # conservative: v7x has the smallest VMEM


def _pick_tile_rows(H, W):
    # Largest divisor of H that is <= 32 and keeps the folded output tile's lane
    # count a multiple of 128 (lane-dense writeback); otherwise full height
    # (full-extent blocks are always layout-legal).
    for d in range(min(H, 32), 0, -1):
        if H % d == 0 and (4 * d * W) % 128 == 0:
            return d
    return H


# --------------------------------------------------------------------------
# Upsample forward.
#   x : (B, n_feat, H, W) f32 (NCHW), w : (2*n_feat, n_feat, 3, 3) f32 (OIHW)
#   returns (B, n_feat // 2, 2H, 2W) f32
# --------------------------------------------------------------------------
def upsample(x, w, *, tile_rows=None, fold_pixel_shuffle=None):
    B, Ci, H, W = x.shape
    Co, Ci_w, kh, kw = w.shape
    assert (Ci_w, kh, kw) == (Ci, 3, 3), "expected 3x3 OIHW weights matching x"
    assert Co % 4 == 0, "PixelShuffle(2) requires Cout % 4 == 0"
    Cq = Co // 4

    TH = _pick_tile_rows(H, W) if tile_rows is None else int(tile_rows)
    assert H % TH == 0, "tile_rows must divide H"
    n_t = H // TH
    THW = TH * W

    fold = _strided_store_ok() if fold_pixel_shuffle is None else bool(fold_pixel_shuffle)
    roll_numpy = _roll_is_numpy()

    # Zero-pad Cin to a multiple of 16 (bf16 sublane packing) so every tap slab in
    # the im2col scratch stays vreg-aligned (review item).
    Ci_p = ((Ci + 15) // 16) * 16
    if Ci_p != Ci:
        x = jnp.pad(x, ((0, 0), (0, Ci_p - Ci), (0, 0), (0, 0)))
        w = jnp.pad(w, ((0, 0), (0, Ci_p - Ci), (0, 0), (0, 0)))
    x_flat = x.reshape(B, Ci_p, H * W)                 # free view

    # Weight matrix: rows grouped by shuffle quadrant g = 2i + j
    # (row g*Cq + c  <->  conv output channel 4c + g); columns = (ky*3 + kx)*Ci_p + ci
    # in lockstep with the kernel's tap ordering (dy outer, dx inner).
    w_g = w.reshape(Cq, 4, Ci_p, 3, 3)
    w_g = jnp.transpose(w_g, (1, 0, 3, 4, 2))          # (4, Cq, 3, 3, Ci_p)
    w_mat = w_g.reshape(Co, 9 * Ci_p).astype(jnp.bfloat16)

    if fold:
        out_shape = jax.ShapeDtypeStruct((B, Cq, 4 * H * W), jnp.float32)
        out_specs = pl.BlockSpec((1, Cq, 4 * THW), lambda b, t: (b, 0, t))
        out_block_bytes = Cq * 4 * THW * 4
    else:
        out_shape = jax.ShapeDtypeStruct((B, Co, H * W), jnp.float32)
        out_specs = pl.BlockSpec((1, Co, THW), lambda b, t: (b, 0, t))
        out_block_bytes = Co * THW * 4

    # Generation-aware VMEM budget derived from the actual buffers (review item).
    est = (2 * Ci_p * H * W * 4            # resident input block (double-buffered)
           + 2 * Co * 9 * Ci_p * 2         # weights (bf16)
           + 2 * out_block_bytes           # output block (double-buffered)
           + 9 * Ci_p * THW * 2            # im2col scratch (bf16)
           + 8 * Ci_p * THW * 4            # tap temporaries / headroom
           + (4 << 20))
    vmem_limit = min(max(est, 32 << 20), int(0.9 * _physical_vmem_bytes()))

    kernel = functools.partial(_upsample_kernel, H=H, W=W, TH=TH, Ci_p=Ci_p,
                               Cq=Cq, roll_numpy=roll_numpy, fold=fold)
    y = pl.pallas_call(
        kernel,
        out_shape=out_shape,
        grid=(B, n_t),
        in_specs=[
            pl.BlockSpec((1, Ci_p, H * W), lambda b, t: (b, 0, 0)),
            pl.BlockSpec((Co, 9 * Ci_p), lambda b, t: (0, 0)),
        ],
        out_specs=out_specs,
        scratch_shapes=[pltpu.VMEM((9 * Ci_p, THW), jnp.bfloat16)],
        compiler_params=pltpu.CompilerParams(
            dimension_semantics=("parallel", "parallel"),
            vmem_limit_bytes=vmem_limit,
        ),
    )(x_flat, w_mat)

    if fold:
        # Kernel already wrote the shuffled layout; splitting contiguous dims is free.
        return y.reshape(B, Cq, 2 * H, 2 * W)

    # Fallback: un-fused conv output (channels grouped by quadrant) -> XLA PixelShuffle.
    y = y.reshape(B, 2, 2, Cq, H, W)
    y = jnp.transpose(y, (0, 3, 4, 1, 5, 2))
    return y.reshape(B, Cq, 2 * H, 2 * W)


# --------------------------------------------------------------------------
# Pure-JAX reference (independent implementation, correctness check only)
# --------------------------------------------------------------------------
def ref_upsample(x, w):
    B, Ci, H, W = x.shape
    Co = w.shape[0]
    Cq = Co // 4
    y = lax.conv_general_dilated(
        x, w, window_strides=(1, 1), padding=((1, 1), (1, 1)),
        dimension_numbers=("NCHW", "OIHW", "NCHW"),
        precision=lax.Precision.HIGHEST)
    y = y.reshape(B, Cq, 2, 2, H, W)
    y = jnp.transpose(y, (0, 1, 4, 2, 5, 3))
    return y.reshape(B, Cq, 2 * H, 2 * W)


# --------------------------------------------------------------------------
if __name__ == "__main__":
    B, n_feat, H, W = 2, 8, 16, 16

    key = jax.random.PRNGKey(0)
    kx, kw = jax.random.split(key)
    x = jax.random.normal(kx, (B, n_feat, H, W), jnp.float32)
    w = 0.1 * jax.random.normal(kw, (2 * n_feat, n_feat, 3, 3), jnp.float32)

    # Pre-warm the cached device probes (also usable lazily under jit).
    _roll_is_numpy()
    _strided_store_ok()

    ref = jax.block_until_ready(ref_upsample(x, w))

    # Main path: 2 spatial tiles, PixelShuffle folded into the kernel store
    # (auto-falls back to the unfused store if strided stores are unavailable).
    fwd = jax.jit(functools.partial(upsample, tile_rows=8))
    out = jax.block_until_ready(fwd(x, w))
    assert out.shape == (B, n_feat // 2, 2 * H, 2 * W), out.shape
    err = float(jnp.max(jnp.abs(out - ref)))
    assert jnp.isfinite(err) and err < 5e-2, f"max abs err {err} (folded path)"

    # Fallback path (unfused store + XLA shuffle), single tile — validated too.
    fwd_fb = jax.jit(functools.partial(upsample, fold_pixel_shuffle=False))
    out_fb = jax.block_until_ready(fwd_fb(x, w))
    err_fb = float(jnp.max(jnp.abs(out_fb - ref)))
    assert jnp.isfinite(err_fb) and err_fb < 5e-2, f"max abs err {err_fb} (fallback path)"

    print("KERNEL_OK")
</pallas_src>

<mosaic_0001>
module attributes {stable_mosaic.version = 11 : i64} {
  func.func @probe(%arg0: memref<8x128xf32, #tpu.memory_space<vmem>>, %arg1: memref<8x128xf32, #tpu.memory_space<vmem>>) attributes {dimension_semantics = [], scalar_prefetch = 0 : i64, scratch_operands = 0 : i64, tpu.core_type = #tpu.core_type<tc>} {
    %c0 = arith.constant 0 : index
    %c0_0 = arith.constant 0 : index
    %0 = vector.load %arg0[%c0, %c0_0] : memref<8x128xf32, #tpu.memory_space<vmem>>, vector<8x128xf32>
    %c1_i32 = arith.constant 1 : i32
    %1 = tpu.dynamic_rotate %0 by %c1_i32 dim 1 : vector<8x128xf32>, i32 -> vector<8x128xf32>
    %c0_1 = arith.constant 0 : index
    %c0_2 = arith.constant 0 : index
    %2 = vector.load %arg1[%c0_1, %c0_2] : memref<8x128xf32, #tpu.memory_space<vmem>>, vector<8x128xf32>
    tpu.vector_store %arg1[%c0_1, %c0_2], %1 {strides = array<i32>} : memref<8x128xf32, #tpu.memory_space<vmem>>, vector<8x128xf32>,
    return
  }
}

</mosaic_0001>

<bundles_post_ra>
// kernel: tpu_custom_call.1
= control target key start
LH: loop header
LB: loop body
LE: loop exit
PB: predicated region body
PF: predicated region fallthrough
CT: control target
= control target key end

     0   :  { %6 = vsyncpa [#allocation3], 0  ;;  %s128_s0 = inlined_call_operand.hbm [shape: f32[8,128], index: 0, kind: input, shape index: {}]   ;;  %s129_s1 = inlined_call_operand.hbm [shape: f32[8,128], index: 1, kind: output, shape index: {}]  }
   0x1   :  { %7 = vsyncpa [#allocation4], 0  ;;  %s91_s6 = smov [#allocation2]   ;;  %s43_s10 = scalar_lea.hbm %s128_s0, 128 }
   0x2   :  { %s14_s7 = sshll.u32 %s91_s6, 4  ;;  %p44_p0 = scmp.ne.s32.totalorder %s128_s0, %s43_s10  ;;  %s15_s7 = int_to_ptr.vmem [resolvable:$true] %s14_s7 }
   0x3   :  { %p47_p1 = scmp.lt.u32.totalorder %s43_s10, %s128_s0 }
   0x5   :  { %p49_p2 = pnand %p47_p1, %p44_p0 }
   0x7   :  { %52 = shalt.err (!%p49_p2)
}
   0x8   :  { %s53_s15 = scalar_lea.vmem %s15_s7, 128  ;;  %p58_p4 = scmp.lt.s32.totalorder %s15_s7, %s15_s7 }
   0x9   :  { %p54_p3 = scmp.ne.s32.totalorder %s15_s7, %s53_s15  ;;  %p59_p5 = scmp.lt.s32.totalorder %s53_s15, %s53_s15 }
   0xb   :  { %p60_p6 = por %p59_p5, %p58_p4 }
   0xd   :  { %p61_p7 = pnand %p60_p6, %p54_p3 }
   0xf   :  { %64 = shalt.err (!%p61_p7)
}
  0x10   :  { %17 = dma.hbm_to_vmem [thread:$0]  %s128_s0, 128, %s15_s7, [#allocation3]  }
  0x11   :  { %87 = dma.done.wait [#allocation3], 128  }
  0x12   :  { %88 = vsyncadd [#allocation3], 4294967168  ;;  %v21_v0 = vld [vmem:[#allocation2] sm:$0xff]  ;;  %s92_s18 = smov 1   ;;  %s93_s19 = smov [#allocation5]  }
  0x13   :  { %22 = vrot.lane.b32.xlu0 %v21_v0, %s92_s18  ;;  %s31_s20 = sshll.u32 %s93_s19, 4  ;;  %s32_s20 = int_to_ptr.vmem [resolvable:$true] %s31_s20 }
  0x14   :  { %s65_s21 = scalar_lea.vmem %s32_s20, 128  ;;  %p70_p9 = scmp.lt.s32.totalorder %s32_s20, %s32_s20 }
  0x15   :  { %p66_p8 = scmp.ne.s32.totalorder %s32_s20, %s65_s21  ;;  %p71_p10 = scmp.lt.s32.totalorder %s65_s21, %s65_s21 }
  0x17   :  { %p72_p11 = por %p71_p10, %p70_p9 }
  0x19   :  { %p73_p12 = pnand %p72_p11, %p66_p8 }
  0x85   :  { %v23_v1 = vpop.permute.xlu0 %22 }
  0x86   :  { %24 = vst [vmem:[#allocation5] sm:$0xff] %v23_v1 }
  0x87   :  { %76 = shalt.err (!%p73_p12)
}
  0x88   :  { %s77_s0 = scalar_lea.hbm %s129_s1, 128 }
  0x89   :  { %p78_p13 = scmp.ne.s32.totalorder %s129_s1, %s77_s0  ;;  %p81_p0 = scmp.lt.u32.totalorder %s77_s0, %s129_s1 }
  0x8b   :  { %p83_p1 = pnand %p81_p0, %p78_p13 }
  0x8d   :  { %86 = shalt.err (!%p83_p1)
}
  0x8e   :  { %34 = dma.vmem_to_hbm [thread:$0]  %s32_s20, 128, %s129_s1, [#allocation4]  }
  0x8f   :  { %89 = dma.done.wait [#allocation4], 128  }
  0x90   :  { %90 = vsyncadd [#allocation4], 4294967168 }
  0x91   :  { %38 = vsyncpa [#allocation3], 1 }
  0x92   :  { %39 = vsyncpa [#allocation4], 1 }

</bundles_post_ra>
